<compile_context>
chip_gen: v7x
topology: tpu7x:2x2x1
jax: 0.10.0
libtpu: 0.0.40
codegen_flags: <defaults>
</compile_context>

<pallas_src>
import functools

import jax
import jax.numpy as jnp
from jax import lax
from jax.experimental import pallas as pl
from jax.experimental.pallas import tpu as pltpu


def _patch_matmul_kernel(x_ref, w_ref, b_ref, o_ref):
    # One (tm, Kp) tile of patches times a resident (Kp, tn) weight slice, plus bias.
    acc = jnp.dot(x_ref[...], w_ref[...], preferred_element_type=jnp.float32)
    o_ref[...] = (acc + b_ref[...]).astype(o_ref.dtype)


def _vmem_budget_bytes():
    """Per-generation usable VMEM budget (leave >=16 MiB compiler headroom)."""
    try:
        cap = pltpu.get_tpu_info().vmem_capacity_bytes
    except Exception:  # pragma: no cover - conservative fallback
        cap = 64 << 20
    return max(min(cap - (16 << 20), 100 << 20), 32 << 20)


def _choose_tiles(M, Kp, Cp, in_b, w_b, out_b, budget):
    """Pick (tm, tn): prefer a fully resident weight (tn == Cp), then the largest tm."""

    def est(tm, tn):
        # double-buffered patch tile + weight slice (conservatively x2) +
        # double-buffered output tile + bias slice.
        return 2 * tm * Kp * in_b + 2 * Kp * tn * w_b + 2 * tm * tn * out_b + 2 * tn * 4

    tn_opts = [Cp] + [d for d in (2048, 1024, 512, 384, 256, 128)
                      if d < Cp and Cp % d == 0]
    tm_opts = [M] if M <= 512 else [2048, 1024, 512, 256, 128]

    for tn in tn_opts:
        for tm in tm_opts:
            if est(tm, tn) <= budget:
                return tm, tn, est(tm, tn)
    tm, tn = tm_opts[-1], tn_opts[-1]
    return tm, tn, est(tm, tn)


def _patch_matmul(patches, w_mat, bias, *, out_dtype):
    """patches (M, Kp) @ w_mat (Kp, Cp) + bias (Cp,) -> (M, Cp). Kp, Cp % 128 == 0."""
    M, Kp = patches.shape
    _, Cp = w_mat.shape
    assert Kp % 128 == 0 and Cp % 128 == 0

    in_b = patches.dtype.itemsize
    w_b = w_mat.dtype.itemsize
    out_b = jnp.dtype(out_dtype).itemsize

    budget = _vmem_budget_bytes()
    tm, tn, est = _choose_tiles(M, Kp, Cp, in_b, w_b, out_b, budget)

    # v7x megacore: if the grid collapsed to a single large M tile, split it in two so
    # both TensorCores get work (one extra ~0.35us grid step on single-TC chips).
    if pl.cdiv(M, tm) == 1 and M > 1024:
        tm = max(128, (((M + 1) // 2 + 127) // 128) * 128)
        est = 2 * tm * Kp * in_b + 2 * Kp * tn * w_b + 2 * tm * tn * out_b + 2 * tn * 4

    m_tiles = pl.cdiv(M, tm)
    c_tiles = Cp // tn
    bias2d = bias.reshape(1, Cp).astype(jnp.float32)

    vmem_limit = int(min(max(int(1.35 * est), 32 << 20), budget))

    cost = pl.CostEstimate(
        flops=2 * M * Kp * Cp,
        transcendentals=0,
        bytes_accessed=M * Kp * in_b + Kp * Cp * w_b + M * Cp * out_b + Cp * 4,
    )

    return pl.pallas_call(
        _patch_matmul_kernel,
        out_shape=jax.ShapeDtypeStruct((M, Cp), out_dtype),
        grid_spec=pltpu.PrefetchScalarGridSpec(
            num_scalar_prefetch=0,
            grid=(m_tiles, c_tiles),
            in_specs=[
                pl.BlockSpec((tm, Kp), lambda i, j: (i, 0)),   # patch rows
                pl.BlockSpec((Kp, tn), lambda i, j: (0, j)),   # weight (resident over i)
                pl.BlockSpec((1, tn), lambda i, j: (0, j)),    # bias slice
            ],
            out_specs=pl.BlockSpec((tm, tn), lambda i, j: (i, j)),
        ),
        compiler_params=pltpu.CompilerParams(
            dimension_semantics=("parallel", "parallel"),
            vmem_limit_bytes=vmem_limit,
        ),
        cost_estimate=cost,
    )(patches, w_mat, bias2d)


def image_block_embedding(x, conv_weight, conv_bias, grid_thw, *,
                          compute_dtype=jnp.bfloat16, out_dtype=None):
    """Forward pass of ImageBlockEmbedding.

    x:             (b, 3, T, H, W)  NCDHW (PyTorch layout)
    conv_weight:   (C, 3, gt, gh, gw)  (PyTorch Conv3d weight layout OIDHW)
    conv_bias:     (C,)
    compute_dtype: matmul input dtype (default bf16, f32 accumulation); None = no cast.
    out_dtype:     output dtype (default: x.dtype).
    returns:       (t, h*w, b, C)  with t=T//gt, h=H//gh, w=W//gw
    """
    gt, gh, gw = grid_thw
    b, ci, T, H, W = x.shape
    C = conv_weight.shape[0]
    t, h, w = T // gt, H // gh, W // gw
    K = ci * gt * gh * gw
    if out_dtype is None:
        out_dtype = x.dtype

    # Cast BEFORE the space-to-depth relayout so that extra HBM pass moves half the bytes.
    if compute_dtype is not None and x.dtype != compute_dtype:
        x = x.astype(compute_dtype)
        conv_weight = conv_weight.astype(compute_dtype)

    # Patchify: non-overlapping (gt, gh, gw) blocks, flattened channel-major
    # (ci, dt, dh, dw) to match the OIDHW Conv3d weight layout.  Row order is
    # (t, h, w, b), matching the (t, h*w, b) output layout, so the kernel output
    # needs no further permutation.
    xb = x.reshape(b, ci, t, gt, h, gh, w, gw)
    xb = jnp.transpose(xb, (2, 4, 6, 0, 1, 3, 5, 7))          # (t, h, w, b, ci, gt, gh, gw)
    patches = xb.reshape(t * h * w * b, K)                     # (M, K)

    w_mat = conv_weight.reshape(C, K).T                        # (K, C)
    bias = conv_bias.astype(jnp.float32)

    # Lane/MXU alignment: pad both the contraction dim K and the output dim C up to
    # multiples of 128 (zero pads are exact; weight/bias pads are tiny, the patch pad
    # rides the relayout pass).
    Kp = ((K + 127) // 128) * 128
    Cp = ((C + 127) // 128) * 128
    if Kp != K:
        patches = jnp.pad(patches, ((0, 0), (0, Kp - K)))
        w_mat = jnp.pad(w_mat, ((0, Kp - K), (0, 0)))
    if Cp != C:
        w_mat = jnp.pad(w_mat, ((0, 0), (0, Cp - C)))
        bias = jnp.pad(bias, (0, Cp - C))

    out = _patch_matmul(patches, w_mat, bias, out_dtype=out_dtype)   # (M, Cp)
    out = out.reshape(t, h * w, b, Cp)
    if Cp != C:
        out = out[..., :C]
    return out


def _reference(x, conv_weight, conv_bias, grid_thw):
    # Pure-JAX reference via conv_general_dilated (matches PyTorch Conv3d).
    y = lax.conv_general_dilated(
        x, conv_weight,
        window_strides=grid_thw, padding="VALID",
        dimension_numbers=("NCDHW", "OIDHW", "NCDHW"))
    y = y + conv_bias.reshape(1, -1, 1, 1, 1)
    b, c, t, h, w = y.shape
    y = y.reshape(b, c, t, h * w)
    return jnp.transpose(y, (2, 3, 0, 1))                      # (t, h*w, b, c)


if __name__ == "__main__":
    key = jax.random.PRNGKey(0)
    k_x, k_w, k_b = jax.random.split(key, 3)

    # Small config: channels=32, grid=(2,4,4); input (b=2, 3, T=4, H=16, W=16).
    grid_thw = (2, 4, 4)
    channels = 32
    b, T, H, W = 2, 4, 16, 16

    x = jax.random.normal(k_x, (b, 3, T, H, W), dtype=jnp.float32)
    conv_weight = jax.random.normal(
        k_w, (channels, 3) + grid_thw, dtype=jnp.float32) * 0.02
    conv_bias = jax.random.normal(k_b, (channels,), dtype=jnp.float32) * 0.02

    ref = _reference(x, conv_weight, conv_bias, grid_thw)

    # Default path: bf16 compute, f32 accumulation / output.
    fwd_bf16 = jax.jit(functools.partial(image_block_embedding, grid_thw=grid_thw))
    out_bf16 = jax.block_until_ready(fwd_bf16(x, conv_weight, conv_bias))
    assert out_bf16.shape == ref.shape == (T // 2, (H // 4) * (W // 4), b, channels)
    assert jnp.allclose(out_bf16, ref, atol=2e-2, rtol=2e-2)

    # Full-precision path: f32 end to end, tight tolerance.
    fwd_f32 = jax.jit(functools.partial(
        image_block_embedding, grid_thw=grid_thw, compute_dtype=None))
    out_f32 = jax.block_until_ready(fwd_f32(x, conv_weight, conv_bias))
    assert out_f32.shape == ref.shape
    assert jnp.allclose(out_f32, ref, atol=1e-4, rtol=1e-4)

    print("KERNEL_OK")
</pallas_src>

<mosaic_0001>
module attributes {stable_mosaic.version = 11 : i64} {
  func.func @_patch_matmul_kernel(%arg0: i32, %arg1: i32, %arg2: memref<64x128xbf16, #tpu.memory_space<vmem>>, %arg3: memref<128x128xbf16, #tpu.memory_space<vmem>>, %arg4: memref<1x128xf32, #tpu.memory_space<vmem>>, %arg5: memref<64x128xf32, #tpu.memory_space<vmem>>) attributes {dimension_semantics = [#tpu.dimension_semantics<parallel>, #tpu.dimension_semantics<parallel>], iteration_bounds = array<i64: 1, 1>, scalar_prefetch = 0 : i64, scratch_operands = 0 : i64, tpu.core_type = #tpu.core_type<tc>, window_params = [{transform_indices = @transform_0, window_bounds = array<i64: 64, 128>}, {transform_indices = @transform_1, window_bounds = array<i64: 128, 128>}, {transform_indices = @transform_2, window_bounds = array<i64: 1, 128>}, {transform_indices = @transform_3, window_bounds = array<i64: 64, 128>}]} {
    %c0 = arith.constant 0 : index
    %c0_0 = arith.constant 0 : index
    %0 = vector.load %arg2[%c0, %c0_0] : memref<64x128xbf16, #tpu.memory_space<vmem>>, vector<64x128xbf16>
    %c0_1 = arith.constant 0 : index
    %c0_2 = arith.constant 0 : index
    %1 = vector.load %arg3[%c0_1, %c0_2] : memref<128x128xbf16, #tpu.memory_space<vmem>>, vector<128x128xbf16>
    %cst = arith.constant dense<0.000000e+00> : vector<64x128xf32>
    %2 = tpu.matmul %0, %1, %cst {dimension_numbers = #tpu.dot_dimension_numbers<[1], [0], [0], [1], [0, 0, 1, 1], [], []>} : vector<64x128xbf16>, vector<128x128xbf16>, vector<64x128xf32> -> vector<64x128xf32>
    %c0_3 = arith.constant 0 : index
    %c0_4 = arith.constant 0 : index
    %3 = vector.load %arg4[%c0_3, %c0_4] : memref<1x128xf32, #tpu.memory_space<vmem>>, vector<1x128xf32>
    %4 = vector.broadcast %3 : vector<1x128xf32> to vector<64x128xf32>
    %5 = arith.addf %2, %4 : vector<64x128xf32>
    %c0_5 = arith.constant 0 : index
    %c0_6 = arith.constant 0 : index
    %6 = vector.load %arg5[%c0_5, %c0_6] : memref<64x128xf32, #tpu.memory_space<vmem>>, vector<64x128xf32>
    tpu.vector_store %arg5[%c0_5, %c0_6], %5 {strides = array<i32>} : memref<64x128xf32, #tpu.memory_space<vmem>>, vector<64x128xf32>,
    return
  }
  func.func @transform_0(%arg0: i32, %arg1: i32) -> (i32, i32) {
    %c0_i32 = arith.constant 0 : i32
    %c0_i32_0 = arith.constant 0 : i32
    return %arg0, %c0_i32 : i32, i32
  }
  func.func @transform_1(%arg0: i32, %arg1: i32) -> (i32, i32) {
    %c0_i32 = arith.constant 0 : i32
    %c0_i32_0 = arith.constant 0 : i32
    return %c0_i32, %arg1 : i32, i32
  }
  func.func @transform_2(%arg0: i32, %arg1: i32) -> (i32, i32) {
    %c0_i32 = arith.constant 0 : i32
    %c0_i32_0 = arith.constant 0 : i32
    return %c0_i32, %arg1 : i32, i32
  }
  func.func @transform_3(%arg0: i32, %arg1: i32) -> (i32, i32) {
    %c0_i32 = arith.constant 0 : i32
    return %arg0, %arg1 : i32, i32
  }
}

</mosaic_0001>

<bundles_post_ra>
// kernel: image_block_embedding.1
= control target key start
LH: loop header
LB: loop body
LE: loop exit
PB: predicated region body
PF: predicated region fallthrough
CT: control target
= control target key end

     0   :  { %s386_s0 = inlined_call_operand.vmem [shape: bf16[64,128], index: 0, kind: input, shape index: {}]   ;;  %s387_s1 = inlined_call_operand.vmem [shape: bf16[128,128], index: 1, kind: input, shape index: {}]   ;;  %s388_s2 = inlined_call_operand.vmem [shape: f32[1,128], index: 2, kind: input, shape index: {}]   ;;  %s389_s3 = inlined_call_operand.hbm [shape: f32[64,128], index: 3, kind: output, shape index: {}]  }
   0x1   :  { %v276_v0 = vld [vmem:[%s387_s1] sm:$0xff]   ;;  %v277_v1 = vld [vmem:[%s387_s1 + $0x8] sm:$0xff]   ;;  %v278_v2 = vld [vmem:[%s387_s1 + $0x10] sm:$0xff]  }
   0x2   :  { %233 = vmatprep.subr.bf16.mxu0 %v276_v0  ;;  %257 = vmatprep.subr.bf16.mxu1 %v276_v0  ;;  %v279_v3 = vld [vmem:[%s387_s1 + $0x18] sm:$0xff]   ;;  %v284_v4 = vld [vmem:[%s386_s0] sm:$0xff]   ;;  %v285_v5 = vld [vmem:[%s386_s0 + $0x10] sm:$0xff]  }
   0x3   :  { %234 = vmatpush3.bf16.msra.mxu0 %v276_v0  ;;  %265 = vmatpush3.bf16.msra.mxu1 %v276_v0  ;;  %v280_v6 = vld [vmem:[%s387_s1 + $0x20] sm:$0xff]  }
   0x4   :  { %235 = vmatprep.subr.bf16.mxu0 %v277_v1  ;;  %258 = vmatprep.subr.bf16.mxu1 %v277_v1 }
   0x5   :  { %249 = vmatprep.mubr.bf16.mxu0 %v284_v4 }
   0x7   :  { %236 = vmatpush3.bf16.msra.mxu0 %v277_v1  ;;  %266 = vmatpush3.bf16.msra.mxu1 %v277_v1 }
   0x8   :  { %237 = vmatprep.subr.bf16.mxu0 %v278_v2  ;;  %259 = vmatprep.subr.bf16.mxu1 %v278_v2 }
   0xb   :  { %238 = vmatpush3.bf16.msra.mxu0 %v278_v2  ;;  %267 = vmatpush3.bf16.msra.mxu1 %v278_v2 }
   0xc   :  { %239 = vmatprep.subr.bf16.mxu0 %v279_v3  ;;  %260 = vmatprep.subr.bf16.mxu1 %v279_v3 }
   0xd   :  { %8 = vsyncpa [#allocation3], 0  ;;  %253 = vmatprep.mubr.bf16.mxu1 %v285_v5  ;;  %v281_v7 = vld [vmem:[%s387_s1 + $0x28] sm:$0xff]   ;;  %v282_v8 = vld [vmem:[%s387_s1 + $0x30] sm:$0xff]  }
   0xe   :  { %v283_v9 = vld [vmem:[%s387_s1 + $0x38] sm:$0xff]   ;;  %v286_v10 = vld [vmem:[%s386_s0 + $0x8] sm:$0xff]   ;;  %v208_v12 = vld [vmem:[%s388_s2] ss:$0 sm:$0xff]  ;;  %s312_s1 = smov [#allocation2]  }
   0xf   :  { %240 = vmatpush3.bf16.msra.mxu0 %v279_v3  ;;  %268 = vmatpush3.bf16.msra.mxu1 %v279_v3  ;;  %v287_v11 = vld [vmem:[%s386_s0 + $0x18] sm:$0xff]   ;;  %s197_s11 = sshll.u32 %s312_s1, 4  ;;  %s198_s11 = int_to_ptr.vmem [resolvable:$true] %s197_s11 }
  0x10   :  { %241 = vmatprep.subr.bf16.mxu0 %v280_v6  ;;  %261 = vmatprep.subr.bf16.mxu1 %v280_v6  ;;  %s288_s0 = scalar_lea.vmem %s198_s11, 1024  ;;  %p293_p1 = scmp.lt.s32.totalorder %s198_s11, %s198_s11 }
  0x11   :  { %p289_p0 = scmp.ne.s32.totalorder %s198_s11, %s288_s0  ;;  %p294_p2 = scmp.lt.s32.totalorder %s288_s0, %s288_s0 }
  0x13   :  { %242 = vmatpush3.bf16.msra.mxu0 %v280_v6  ;;  %269 = vmatpush3.bf16.msra.mxu1 %v280_v6  ;;  %p295_p3 = por %p294_p2, %p293_p1 }
  0x14   :  { %243 = vmatprep.subr.bf16.mxu0 %v281_v7  ;;  %262 = vmatprep.subr.bf16.mxu1 %v281_v7 }
  0x15   :  { %p296_p4 = pnand %p295_p3, %p289_p0 }
  0x17   :  { %244 = vmatpush3.bf16.msra.mxu0 %v281_v7  ;;  %270 = vmatpush3.bf16.msra.mxu1 %v281_v7 }
  0x18   :  { %245 = vmatprep.subr.bf16.mxu0 %v282_v8  ;;  %263 = vmatprep.subr.bf16.mxu1 %v282_v8 }
  0x1b   :  { %246 = vmatpush3.bf16.msra.mxu0 %v282_v8  ;;  %271 = vmatpush3.bf16.msra.mxu1 %v282_v8 }
  0x1c   :  { %247 = vmatprep.subr.bf16.mxu0 %v283_v9  ;;  %264 = vmatprep.subr.bf16.mxu1 %v283_v9 }
  0x1f   :  { %248 = vmatpush3.bf16.msra.mxu0 %v283_v9  ;;  %272 = vmatpush3.bf16.msra.mxu1 %v283_v9 }
  0x22   :  { %250 = vmatmul.mubr.bf16.vlgmr.msra.gmra.mrb[0].mxu0 %v286_v10  ;;  %254 = vmatmul.mubr.bf16.vlgmr.msra.gmra.mrb[0].mxu1 %v287_v11 }
  0xf5   :  { %v251_v13 = vpop.f32.mrb[0].mxu0  ;;  %v255_v14 = vpop.f32.mrb[0].mxu1 }
  0xf6   :  { %v162_v15 = vadd.f32 %v251_v13, %v208_v12  ;;  %v178_v16 = vadd.f32 %v255_v14, %v208_v12  ;;  %v153_v17 = vpop.f32.mrb[1].mxu0  ;;  %v169_v18 = vpop.f32.mrb[1].mxu1 }
  0xf7   :  { %v154_v19 = vadd.f32 %v208_v12, %v153_v17  ;;  %v170_v20 = vadd.f32 %v208_v12, %v169_v18  ;;  %v252_v21 = vpop.f32.mrb[2].mxu0  ;;  %v256_v22 = vpop.f32.mrb[2].mxu1 }
  0xf8   :  { %186 = vst [vmem:[#allocation2 + $0x10] sm:$0xff] %v162_v15  ;;  %190 = vst [vmem:[#allocation2 + $0x30] sm:$0xff] %v178_v16  ;;  %v165_v23 = vadd.f32 %v252_v21, %v208_v12  ;;  %v181_v24 = vadd.f32 %v256_v22, %v208_v12  ;;  %v156_v25 = vpop.f32.mrb[3].mxu0  ;;  %v172_v26 = vpop.f32.mrb[3].mxu1 }
  0xf9   :  { %184 = vst [vmem:[#allocation2] sm:$0xff] %v154_v19  ;;  %188 = vst [vmem:[#allocation2 + $0x20] sm:$0xff] %v170_v20  ;;  %v157_v27 = vadd.f32 %v208_v12, %v156_v25  ;;  %v173_v28 = vadd.f32 %v208_v12, %v172_v26 }
  0xfa   :  { %187 = vst [vmem:[#allocation2 + $0x18] sm:$0xff] %v165_v23  ;;  %191 = vst [vmem:[#allocation2 + $0x38] sm:$0xff] %v181_v24 }
  0xfb   :  { %185 = vst [vmem:[#allocation2 + $0x8] sm:$0xff] %v157_v27  ;;  %189 = vst [vmem:[#allocation2 + $0x28] sm:$0xff] %v173_v28 }
  0xfc   :  { %299 = shalt.err (!%p296_p4)
}
  0xfd   :  { %s300_s13 = scalar_lea.hbm %s389_s3, 1024 }
  0xfe   :  { %p301_p5 = scmp.ne.s32.totalorder %s389_s3, %s300_s13  ;;  %p304_p6 = scmp.lt.u32.totalorder %s300_s13, %s389_s3 }
 0x100   :  { %p306_p7 = pnand %p304_p6, %p301_p5 }
 0x102   :  { %309 = shalt.err (!%p306_p7)
}
 0x103   :  { %s313_s18 = smov 128   ;;  %s314_s19 = smov 8  }
 0x104   :  { %203 = dma.vmem_to_hbm [thread:$0]  %s198_s11, 1024, %s389_s3, [#allocation3], %s313_s18, %s313_s18, %s314_s19  }
 0x105   :  { %310 = dma.done.wait [#allocation3], 1024  }
 0x106   :  { %311 = vsyncadd [#allocation3], 4294966272 }
 0x107   :  { %207 = vsyncpa [#allocation3], 1 }

</bundles_post_ra>
